<compile_context>
chip_gen: v7x
topology: tpu7x:2x2x1
jax: 0.10.0
libtpu: 0.0.40
codegen_flags: <defaults>
</compile_context>

<pallas_src>
import math

import jax
import jax.numpy as jnp
from jax.experimental import pallas as pl
from jax.experimental.pallas import tpu as pltpu


def _make_pe_kernel(d_model: int, t_s: int):
    """Build the kernel with compile-time constants closed over."""
    neg_log_scale = -math.log(10000.0) / float(d_model)

    def kernel(x_ref, o_ref, pe_ref):
        # grid = (seq_tiles, batch); batch is innermost.
        s = pl.program_id(0)
        b = pl.program_id(1)

        # (Re)compute the PE tile only once per sequence tile; reuse across batch.
        # Correct only while the batch grid axis is "arbitrary" (unsharded).
        @pl.when(b == 0)
        def _():
            tS, Dk = pe_ref.shape
            # Feature index on a single (1, Dk) lane row.
            j = jax.lax.broadcasted_iota(jnp.int32, (1, Dk), 1)
            j_even = (j >> 1).astype(jnp.float32) * 2.0          # 2*(j//2)
            inv_freq = jnp.exp(j_even * neg_log_scale)           # (1, Dk)
            # Absolute position column for this tile (tS, 1).
            base = (s * t_s).astype(jnp.float32)
            pos = jax.lax.broadcasted_iota(jnp.int32, (tS, 1), 0).astype(jnp.float32) + base
            t = pos * inv_freq                                   # (tS, Dk)
            # Even lanes -> sin, odd lanes -> cos (exact f32-buffer parity).
            pe_ref[...] = jnp.where((j & 1) == 1, jnp.cos(t), jnp.sin(t))

        # Main mem-bound add (PE kept in f32, matching the f32 PyTorch buffer).
        o_ref[...] = (x_ref[...].astype(jnp.float32) + pe_ref[...]).astype(o_ref.dtype)

    return kernel


def _vmem_capacity_bytes() -> int:
    try:
        return int(pltpu.get_tpu_info().vmem_capacity_bytes)
    except Exception:
        return 64 * 1024 * 1024  # conservative floor (v7x per-TensorCore)


def _choose_seq_tile(S: int, D: int, itemsize: int, budget_bytes: int) -> int:
    """Pick a sequence tile: ~4 MiB blocks, clamped by VMEM budget and S."""
    if S <= 8:
        return S  # full-dim block (always legal)
    # Per-row live bytes: double-buffered input + double-buffered output + f32 PE scratch.
    per_row = D * (4 * itemsize + 4)
    rows_vmem = max(8, (budget_bytes - (2 << 20)) // per_row)
    rows_target = max(8, (4 * 1024 * 1024) // (D * max(itemsize, 1)))
    t = int(min(rows_vmem, rows_target))
    t -= t % 8
    t = max(8, t)
    if t >= S:
        if S >= 16:
            # Whole sequence would fit in one tile: keep >= 2 tiles so the
            # "parallel" seq axis can feed v7x's second TensorCore.
            t = min(S, (((S + 1) // 2) + 7) // 8 * 8)
        else:
            t = S
    return t


def positional_encoding(x: jax.Array) -> jax.Array:
    """x: [batch, seq_len, d_model] -> same shape with sinusoidal PE added."""
    B, S, D = x.shape
    itemsize = x.dtype.itemsize

    capacity = _vmem_capacity_bytes()
    budget = max(16 << 20, min(int(capacity * 0.7), capacity - (16 << 20)))

    t_s = _choose_seq_tile(S, D, itemsize, budget)
    grid_s = pl.cdiv(S, t_s)

    kernel = _make_pe_kernel(D, t_s)

    # Explicit VMEM limit: double-buffered in+out blocks + f32 PE scratch + slack.
    blk_bytes = t_s * D * itemsize
    pe_bytes = t_s * D * 4
    vmem_limit = int(min(max(32 << 20, 4 * blk_bytes + pe_bytes + (2 << 20)), capacity))

    return pl.pallas_call(
        kernel,
        out_shape=jax.ShapeDtypeStruct((B, S, D), x.dtype),
        grid_spec=pltpu.PrefetchScalarGridSpec(
            num_scalar_prefetch=0,
            grid=(grid_s, B),  # batch innermost so the PE scratch is reused across it
            in_specs=[
                pl.BlockSpec((None, t_s, D), lambda s, b: (b, s, 0)),
            ],
            out_specs=pl.BlockSpec((None, t_s, D), lambda s, b: (b, s, 0)),
            scratch_shapes=[pltpu.VMEM((t_s, D), jnp.float32)],
        ),
        compiler_params=pltpu.CompilerParams(
            dimension_semantics=("parallel", "arbitrary"),
            vmem_limit_bytes=vmem_limit,
        ),
        input_output_aliases={0: 0},
    )(x)


def _reference(x: jax.Array, max_len: int = 5000) -> jax.Array:
    """Pure-JAX replica of the PyTorch buffer construction + forward."""
    B, S, D = x.shape
    position = jnp.arange(max_len, dtype=jnp.float32)[:, None]
    div_term = jnp.exp(
        jnp.arange(0, D, 2, dtype=jnp.float32) * (-math.log(10000.0) / D)
    )
    pe = jnp.zeros((max_len, D), dtype=jnp.float32)
    pe = pe.at[:, 0::2].set(jnp.sin(position * div_term))
    pe = pe.at[:, 1::2].set(jnp.cos(position * div_term))
    return (x + pe[None, :S, :]).astype(x.dtype)


if __name__ == "__main__":
    key = jax.random.PRNGKey(0)

    # Primary test: lane-dense d_model (multiple of 128), multiple seq tiles.
    B, S, D = 2, 64, 128
    x = jax.random.normal(key, (B, S, D), dtype=jnp.float32)
    out = jax.block_until_ready(positional_encoding(x))
    ref = _reference(x)
    assert out.shape == x.shape and out.dtype == x.dtype
    assert jnp.allclose(out, ref, atol=1e-5, rtol=1e-5)

    # Narrow-feature path: d_model < 128 (masked stores, no pad/slice round trips).
    B2, S2, D2 = 2, 8, 32
    x2 = jax.random.normal(jax.random.PRNGKey(1), (B2, S2, D2), dtype=jnp.float32)
    out2 = jax.block_until_ready(positional_encoding(x2))
    ref2 = _reference(x2)
    assert out2.shape == x2.shape and out2.dtype == x2.dtype
    assert jnp.allclose(out2, ref2, atol=1e-5, rtol=1e-5)

    print("KERNEL_OK")
</pallas_src>

<mosaic_0001>
module attributes {stable_mosaic.version = 11 : i64} {
  func.func @kernel(%arg0: i32, %arg1: i32, %arg2: memref<1x32x128xf32, #tpu.memory_space<vmem>>, %arg3: memref<1x32x128xf32, #tpu.memory_space<vmem>>, %arg4: memref<32x128xf32, #tpu.memory_space<vmem>>) attributes {dimension_semantics = [#tpu.dimension_semantics<parallel>, #tpu.dimension_semantics<arbitrary>], iteration_bounds = array<i64: 2, 2>, scalar_prefetch = 0 : i64, scratch_operands = 1 : i64, tpu.core_type = #tpu.core_type<tc>, window_params = [{transform_indices = @transform_0, window_bounds = array<i64: 1, 32, 128>}, {transform_indices = @transform_1, window_bounds = array<i64: 1, 32, 128>}]} {
    %c0_i32 = arith.constant 0 : i32
    %0 = arith.cmpi eq, %arg1, %c0_i32 : i32
    %1 = arith.extui %0 : i1 to i32
    %c0_i32_0 = arith.constant 0 : i32
    %2 = arith.cmpi ne, %1, %c0_i32_0 : i32
    scf.if %2 {
      %10 = tpu.iota {dimensions = array<i32: 1>} : vector<1x128xi32>
      %c1_i32 = arith.constant 1 : i32
      %11 = vector.broadcast %c1_i32 : i32 to vector<1x128xi32>
      %12 = arith.shrsi %10, %11 : vector<1x128xi32>
      %13 = arith.sitofp %12 : vector<1x128xi32> to vector<1x128xf32>
      %cst = arith.constant 2.000000e+00 : f32
      %14 = vector.broadcast %cst : f32 to vector<1x128xf32>
      %15 = arith.mulf %13, %14 : vector<1x128xf32>
      %cst_8 = arith.constant -0.0719557852 : f32
      %16 = vector.broadcast %cst_8 : f32 to vector<1x128xf32>
      %17 = arith.mulf %15, %16 : vector<1x128xf32>
      %18 = math.exp %17 : vector<1x128xf32>
      %c32_i32 = arith.constant 32 : i32
      %19 = arith.muli %arg0, %c32_i32 : i32
      %20 = arith.sitofp %19 : i32 to f32
      %21 = tpu.iota {dimensions = array<i32: 0>} : vector<32x1xi32>
      %22 = arith.sitofp %21 : vector<32x1xi32> to vector<32x1xf32>
      %23 = vector.broadcast %20 : f32 to vector<32x1xf32>
      %24 = arith.addf %22, %23 : vector<32x1xf32>
      %25 = vector.broadcast %24 : vector<32x1xf32> to vector<32x128xf32>
      %26 = vector.broadcast %18 : vector<1x128xf32> to vector<32x128xf32>
      %27 = arith.mulf %25, %26 : vector<32x128xf32>
      %c1_i32_9 = arith.constant 1 : i32
      %28 = vector.broadcast %c1_i32_9 : i32 to vector<1x128xi32>
      %29 = arith.andi %10, %28 : vector<1x128xi32>
      %c1_i32_10 = arith.constant 1 : i32
      %30 = vector.broadcast %c1_i32_10 : i32 to vector<1x128xi32>
      %31 = arith.cmpi eq, %29, %30 : vector<1x128xi32>
      %32 = math.cos %27 : vector<32x128xf32>
      %33 = math.sin %27 : vector<32x128xf32>
      %34 = vector.shape_cast %31 : vector<1x128xi1> to vector<1x128xi1>
      %35 = vector.broadcast %34 : vector<1x128xi1> to vector<32x128xi1>
      %36 = arith.select %35, %32, %33 : vector<32x128xi1>, vector<32x128xf32>
      %c0_11 = arith.constant 0 : index
      %c0_12 = arith.constant 0 : index
      %37 = vector.load %arg4[%c0_11, %c0_12] : memref<32x128xf32, #tpu.memory_space<vmem>>, vector<32x128xf32>
      tpu.vector_store %arg4[%c0_11, %c0_12], %36 {strides = array<i32>} : memref<32x128xf32, #tpu.memory_space<vmem>>, vector<32x128xf32>,
    } else {
    }
    %c0 = arith.constant 0 : index
    %c0_1 = arith.constant 0 : index
    %c0_2 = arith.constant 0 : index
    %3 = vector.load %arg2[%c0, %c0_1, %c0_2] : memref<1x32x128xf32, #tpu.memory_space<vmem>>, vector<1x32x128xf32>
    %4 = vector.shape_cast %3 : vector<1x32x128xf32> to vector<32x128xf32>
    %c0_3 = arith.constant 0 : index
    %c0_4 = arith.constant 0 : index
    %5 = vector.load %arg4[%c0_3, %c0_4] : memref<32x128xf32, #tpu.memory_space<vmem>>, vector<32x128xf32>
    %6 = arith.addf %4, %5 : vector<32x128xf32>
    %c0_5 = arith.constant 0 : index
    %c0_6 = arith.constant 0 : index
    %c0_7 = arith.constant 0 : index
    %7 = vector.load %arg3[%c0_5, %c0_6, %c0_7] : memref<1x32x128xf32, #tpu.memory_space<vmem>>, vector<1x32x128xf32>
    %8 = vector.shape_cast %7 : vector<1x32x128xf32> to vector<32x128xf32>
    %9 = vector.shape_cast %6 : vector<32x128xf32> to vector<1x32x128xf32>
    tpu.vector_store %arg3[%c0_5, %c0_6, %c0_7], %9 {strides = array<i32>} : memref<1x32x128xf32, #tpu.memory_space<vmem>>, vector<1x32x128xf32>,
    return
  }
  func.func @transform_0(%arg0: i32, %arg1: i32) -> (i32, i32, i32) {
    %c0_i32 = arith.constant 0 : i32
    %c0_i32_0 = arith.constant 0 : i32
    return %arg1, %arg0, %c0_i32 : i32, i32, i32
  }
  func.func @transform_1(%arg0: i32, %arg1: i32) -> (i32, i32, i32) {
    %c0_i32 = arith.constant 0 : i32
    %c0_i32_0 = arith.constant 0 : i32
    return %arg1, %arg0, %c0_i32 : i32, i32, i32
  }
}

</mosaic_0001>

<bundles_post_ra>
// kernel: tpu_custom_call.1
= control target key start
LH: loop header
LB: loop body
LE: loop exit
PB: predicated region body
PF: predicated region fallthrough
CT: control target
= control target key end

     0   :  { %6 = vsyncpa [#allocation4], 0  ;;  %s2032_s0 = inlined_call_operand.hbm [shape: f32[2,64,128], index: 0, kind: input, shape index: {}, may-alias: {0,1}]   ;;  %s2033_s1 = inlined_call_operand.hbm [shape: f32[2,64,128], index: 1, kind: output, shape index: {}, may-alias: {0,1}]  }
   0x1   :  { %8 = vsyncpa [#allocation4 + $0x1], 0 }
   0x2   :  { %9 = vsyncpa [#allocation5], 0 }
   0x3   :  { %11 = vsyncpa [#allocation5 + $0x1], 0  ;;  %s1474_s6 = smov 0   ;;  %s1476_s7 = smov 0  }
   0x4   :  { %s1478_s8 = smov 0   ;;  %s1480_s9 = smov 0  }
   0x5   :  { %s1482_s10 = smov 0   ;;  %s1484_s11 = smov 0  }
   0x6   :  { %s1486_s12 = smov 0   ;;  %s1488_s13 = smov 0  }
   0x7 LB: > { %s1149_s14 = sadd.s32 4294967295, %s1450_s13   ;;  %s1150_s15 = sadd.s32 4294967294, %s1450_s13   ;;  %s1450_s13 = sphi %s1488_s13, %s17_s13   ;;  %s1446_s12 = sphi %s1486_s12, %s2054_s12   ;;  %s1442_s11 = sphi %s1484_s11, %s2053_s11   ;;  %s1438_s10 = sphi %s1482_s10, %s2052_s10   ;;  %s1434_s9 = sphi %s1480_s9, %s2051_s9   ;;  %s1430_s8 = sphi %s1478_s8, %s2050_s8   ;;  %s1426_s7 = sphi %s1476_s7, %s2049_s7   ;;  %s1422_s6 = sphi %s1474_s6, %s2048_s6  }
   0x8   : > { %s26_s16 = sadd.s32 1, %s1442_s11  ;;  %s29_s17 = sadd.s32 1, %s1446_s12 }
   0x9   : > { %p27_p0 = scmp.ge.s32.totalorder %s26_s16, 2  ;;  %s38_s18 = sadd.s32 1, %s1430_s8 }
   0xa   : > { %p45_p1 = scmp.ne.s32.totalorder %s1430_s8, %s1426_s7  ;;  %p46_p2 = scmp.eq.s32.totalorder %s1450_s13, 0 }
   0xb   : > { %s2056_s16 = smov (%p27_p0, %s26_s16), 0  ;;  %s2058_s17 = smov (!%p27_p0, %s29_s17), %s1446_s12 }
   0xc   : > { %s33_s19 = ssub.s32 %s1442_s11, %s2056_s16  ;;  %p1527_p3 = por %p46_p2, %p45_p1 }
   0xd   : > { %p31_p4 = scmp.ge.s32.totalorder %s2058_s17, 2  ;;  %p51_p5 = scmp.ne.s32.totalorder %s1426_s7, %s1422_s6 }
   0xe   : > { %p52_p6 = scmp.eq.s32.totalorder %s1149_s14, 0  ;;  %p77_p7 = scmp.eq.s32.totalorder %s1149_s14, 3 }
   0xf   : > { %s2060_s17 = smov (%p31_p4, %s2058_s17), 0  ;;  %p83_p10 = scmp.eq.s32.totalorder %s1150_s15, 3 }
  0x10   : > { %p1535_p8 = por %p52_p6, %p51_p5  ;;  %p1539_p9 = por %p77_p7, %p45_p1 }
  0x11   : > { %s34_s23 = ssub.s32 %s1446_s12, %s2060_s17  ;;  %p1545_p12 = por %p83_p10, %p51_p5 }
  0x12   : > { %s2037_s22 = scalar_select %p1539_p9, 1, 0 }
  0x13   : > { %s35_s24 = sor.u32 %s34_s23, %s33_s19  ;;  %p1228_p13 = scmp.lt.s32.totalorder %s1450_s13, 4 }
  0x14   : > { %p36_p11 = scmp.eq.s32.totalorder %s35_s24, 0  ;;  %s103_s26 = sand.u32 1, %s1430_s8  }
  0x15   : > { %s2038_s25 = scalar_select %p1545_p12, 1, 0 }
  0x16   : > { %s1552_s27 = scalar_select %p36_p11, %s1430_s8, %s38_s18  }
  0x17   : > { %s1153_s28 = sshll.u32 %s103_s26, 5  ;;  %s1154_s29 = sshll.u32 %s1446_s12, 2 }
  0x18   : > { %s1155_s30 = sshll.u32 %s1442_s11, 3  ;;  %s107_s2 = scalar_lea.vmem [#allocation3], %s1153_s28 }
  0x19   : > { %s116_s3 = sshll.u32 %s107_s2, 4  ;;  %s113_s4 = sadd.s32 %s1155_s30, %s1154_s29  ;;  %s1556_s3 = int_to_ptr.vmem [resolvable:$true] %s116_s3 }
  0x1a   : > { %s1156_s5 = sshll.u32 %s113_s4, 7  ;;  %p1560_p0 = pnand %p1228_p13, %p1527_p3 }
  0x1b   : > { %s1567_s18 = scalar_lea.hbm %s2032_s0, %s1156_s5  ;;  %s1569_s23 = scalar_lea.sflag [#allocation4], %s103_s26 }
  0x1c   : > { %s1322_s24 = scalar_lea.hbm %s1567_s18, 512  ;;  %p1324_p2 = pneg %p1560_p0 }
  0x1d   : > { %p1323_p1 = scmp.ne.s32.totalorder %s1567_s18, %s1322_s24  ;;  %s1327_s29 = scalar_lea.hbm %s2032_s0, 2048 }
  0x1e   : > { %p1328_p5 = scmp.lt.u32.totalorder %s1567_s18, %s2032_s0  ;;  %p1329_p6 = scmp.lt.u32.totalorder %s1327_s29, %s1322_s24 }
  0x1f   : > { %p1325_p3 = pnand %p1324_p2, %p1323_p1  ;;  %p1331_p10 = scmp.lt.u32.totalorder %s1322_s24, %s1567_s18 }
  0x20   : > { %p1330_p7 = por %p1329_p6, %p1328_p5 }
  0x21   : > { %p1326_p4 = pneg %p1325_p3 }
  0x22   : > { %p1332_p11 = por %p1331_p10, %p1330_p7 }
  0x24   : > { %p1333_p13 = pnand %p1332_p11, %p1326_p4 }
  0x26   : > { %1336 = shalt.err (!%p1333_p13)
}
  0x27   : > { %s1337_s26 = scalar_lea.vmem %s1556_s3, 512  ;;  %s1452_s4 = smov [#allocation3]  }
  0x28   : > { %p1338_p1 = scmp.ne.s32.totalorder %s1556_s3, %s1337_s26  ;;  %s1342_s5 = sshll.u32 %s1452_s4, 4  ;;  %s1343_s5 = int_to_ptr.vmem [resolvable:$false] %s1342_s5 }
  0x29   : > { %s1344_s15 = scalar_lea.vmem %s1343_s5, 1024  ;;  %p1345_p9 = scmp.lt.s32.totalorder %s1556_s3, %s1343_s5 }
  0x2a   : > { %p1340_p3 = pnand %p1338_p1, %p1324_p2  ;;  %p1346_p5 = scmp.lt.s32.totalorder %s1344_s15, %s1337_s26 }
  0x2c   : > { %p1341_p12 = pneg %p1340_p3  ;;  %p1347_p6 = por %p1346_p5, %p1345_p9 }
  0x2e   : > { %p1348_p7 = pnand %p1347_p6, %p1341_p12 }
  0x30   : > { %1351 = shalt.err (!%p1348_p7)
}
  0x31   : > { %s1453_s19 = smov 128   ;;  %s1454_s24 = smov 8  }
  0x32   : > { %1223 = dma.hbm_to_vmem [thread:$0]  (!%p1560_p0), %s1567_s18, 512, %s1556_s3, %s1569_s23, %s1453_s19, %s1453_s19, %s1454_s24  }
  0x33   : > { %p1157_p2 = scmp.ge.s32.totalorder %s1450_s13, 1  ;;  %p124_p4 = scmp.lt.s32.totalorder %s1450_s13, 5 }
  0x35   : > { %p125_p10 = pnand %p1157_p2, %p124_p4 }
  0x36   : > { %s1600_s20 = sand.u32 (!%p125_p10), 1, %s1426_s7  }
  0x37   : > { %128 = sbr.rel (%p125_p10) target bundleno = 258 (0x102), region = 24  ;;  %s1158_s28 = sshll.u32 (!%p125_p10), %s1600_s20, 5 }
  0x38   : > { %s131_s29 = scalar_lea.sflag (!%p125_p10), [#allocation4], %s1600_s20  ;;  %s1604_s30 = scalar_lea.vmem (!%p125_p10), [#allocation3], %s1158_s28 }
  0x3e   : > { %1413 = dma.done.wait (%p1535_p8), %s131_s29, 512  }
  0x3f   : > { %1415 = vsyncadd (%p1535_p8), %s131_s29, 4294966784  ;;  %s1610_s3 = scalar_lea.vmem [#allocation6], %s1158_s28  ;;  %p1160_p9 = scmp.ne.s32.totalorder %s1434_s9, 0 }
  0x40   : > { %v159_v0 = vlaneseq (!%p1160_p9)  ;;  %s1161_s14 = sshll.u32 (!%p1160_p9), %s1438_s10, 5  ;;  %v1455_v52 = vmov (!%p1160_p9), 683565275   ;;  %v1456_v54 = vmov (!%p1160_p9), 2475754826  }
  0x41   : > { %158 = sbr.rel (%p1160_p9) target bundleno = 230 (0xe6), region = 32  ;;  %s168_s21 = scvt.s32.f32 (!%p1160_p9), %s1161_s14  ;;  %v1457_v56 = vmov (!%p1160_p9), 2131351028   ;;  %v1458_v58 = vmov (!%p1160_p9), 2102212464  }
  0x42   : > { %v1613_v1 = vand.u32 (!%p1160_p9), 127, %v159_v0  ;;  %v170_v5 = vshrl.u32 (!%p1160_p9), %v159_v0, 7  ;;  %v1459_v60 = vmov (!%p1160_p9), 920167782  }
  0x43   : > { %v178_v13 = vstv (!%p1160_p9), %s168_s21 }
  0x44   : > { %v161_v2 = vshra.s32 (!%p1160_p9), %v1613_v1, 1  ;;  %v171_v8 = vadd.s32 (!%p1160_p9), 8, %v170_v5  ;;  %v172_v9 = vadd.s32 (!%p1160_p9), 16, %v170_v5  ;;  %v174_v10 = vcvt.s32.f32 (!%p1160_p9), %v170_v5 }
  0x45   : > { %v173_v18 = vadd.s32 (!%p1160_p9), 24, %v170_v5  ;;  %v1460_v5 = vmov (!%p1160_p9), 1326507024  }
  0x46   : > { %v162_v3 = vcvt.s32.f32 (!%p1160_p9), %v161_v2  ;;  %v175_v11 = vcvt.s32.f32 (!%p1160_p9), %v171_v8  ;;  %v176_v12 = vcvt.s32.f32 (!%p1160_p9), %v172_v9  ;;  %v179_v14 = vadd.f32 (!%p1160_p9), %v178_v13, %v174_v10 }
  0x47   : > { %v177_v24 = vcvt.s32.f32 (!%p1160_p9), %v173_v18 }
  0x48   : > { %v163_v4 = vmul.f32 2.0, %v162_v3  ;;  %v180_v15 = vadd.f32 %v178_v13, %v175_v11  ;;  %v181_v16 = vadd.f32 %v178_v13, %v176_v12 }
  0x49   : > { %v182_v33 = vadd.f32 %v178_v13, %v177_v24 }
  0x4a   : > { %v164_v6 = vmul.f32 -0.071955785, %v163_v4 }
  0x4c   : > { %v165_v7 = vmul.f32 1.442695, %v164_v6 }
  0x4e   : > { %1304 = vpow2.f32 %v165_v7 }
  0x58   : > { %v1305_v17 = vpop.eup %1304 }
  0x59   : > { %v1617_v19 = vmul.f32 %v1305_v17, %v179_v14  ;;  %v1619_v20 = vmul.f32 %v1305_v17, %v180_v15  ;;  %v1621_v21 = vmul.f32 %v1305_v17, %v181_v16  ;;  %v1632_v41 = vmul.f32 %v1305_v17, %v182_v33 }
  0x5b   : > { %v189_v22 = vand.u32 2147483647, %v1617_v19  ;;  %v192_v23 = vand.u32 2139095040, %v1617_v19  ;;  %v292_v25 = vand.u32 2147483647, %v1619_v20  ;;  %v295_v26 = vand.u32 2139095040, %v1619_v20 }
  0x5c   : > { %v398_v31 = vand.u32 2139095040, %v1621_v21  ;;  %v395_v46 = vand.u32 2147483647, %v1621_v21 }
  0x5d   : > { %v193_v27 = vshrl.u32 %v192_v23, 23  ;;  %v196_v28 = vand.u32 8388607, %v189_v22  ;;  %v296_v29 = vshrl.u32 %v295_v26, 23  ;;  %v299_v30 = vand.u32 8388607, %v292_v25 }
  0x5e   : > { %v399_v35 = vshrl.u32 %v398_v31, 23 }
  0x5f   : > { %v1162_v32 = vadd.s32 4294967169, %v193_v27  ;;  %v1166_v34 = vadd.s32 4294967169, %v296_v29  ;;  %v197_v37 = vor.u32 8388608, %v196_v28  ;;  %v300_v38 = vor.u32 8388608, %v299_v30 }
  0x60   : > { %v1170_v40 = vadd.s32 4294967169, %v399_v35 }
  0x61   : > { %v199_v36 = vadd.s32 1, %v1162_v32  ;;  %v302_v39 = vadd.s32 1, %v1166_v34  ;;  %v1635_v47 = vshll.u32 %v197_v37, 8  ;;  %v1637_v49 = vshll.u32 %v300_v38, 8 }
  0x62   : > { %v1639_v50 = vadd.s32 1, %v1170_v40 }
  0x63   : > { %vm200_vm0 = vcmp.gt.s32.totalorder %v199_v36, 0  ;;  %vm303_vm1 = vcmp.gt.s32.totalorder %v302_v39, 0 }
  0x64   : > { %v201_v42 = vsel %vm200_vm0, %v199_v36, 0  ;;  %v304_v45 = vsel %vm303_vm1, %v302_v39, 0  ;;  %vm406_vm6 = vcmp.gt.s32.totalorder %v1639_v50, 0  ;;  %vm191_vm0 = vcmp.lt.s32.totalorder %v1617_v19, 0 }
  0x65   : > { %v202_v43 = vshrl.u32 %v201_v42, 5  ;;  %v203_v44 = vand.u32 31, %v201_v42  ;;  %v306_v48 = vand.u32 31, %v304_v45  ;;  %v1646_v62 = vshrl.u32 %v304_v45, 5 }
  0x67   : > { %v204_v51 = vsub.s32 32, %v203_v44  ;;  %v206_v53 = vshll.u32 %v1455_v52, %v203_v44  ;;  %v209_v55 = vshll.u32 %v1456_v54, %v203_v44  ;;  %v212_v57 = vshll.u32 %v1457_v56, %v203_v44 }
  0x68   : > { %v215_v59 = vshll.u32 %v1458_v58, %v203_v44  ;;  %v218_v61 = vshll.u32 %v1459_v60, %v203_v44  ;;  %vm221_vm2 = vcmp.lt.s32.totalorder %v202_v43, 1  ;;  %vm222_vm3 = vcmp.lt.s32.totalorder %v202_v43, 2 }
  0x69   : > { %v205_v63 = vshrl.u32 %v1455_v52, %v204_v51  ;;  %v207_v0 = vshrl.u32 %v1456_v54, %v204_v51  ;;  %v210_v2 = vshrl.u32 %v1457_v56, %v204_v51  ;;  %v213_v3 = vshrl.u32 %v1458_v58, %v204_v51 }
  0x6a   : > { %v216_v4 = vshrl.u32 %v1459_v60, %v204_v51  ;;  %v219_v6 = vshrl.u32 %v1460_v5, %v204_v51  ;;  %vm224_vm4 = vcmp.lt.s32.totalorder %v202_v43, 4  ;;  %v307_v10 = vsub.s32 32, %v306_v48 }
  0x6b   : > { %v208_v7 = vor.u32 %v207_v0, %v206_v53  ;;  %v211_v8 = vor.u32 %v210_v2, %v209_v55  ;;  %v214_v9 = vor.u32 %v213_v3, %v212_v57  ;;  %vm223_vm5 = vcmp.lt.s32.totalorder %v202_v43, 3 }
  0x6c   : > { %v217_v11 = vor.u32 %v216_v4, %v215_v59  ;;  %v220_v12 = vor.u32 %v219_v6, %v218_v61  ;;  %v309_v13 = vshll.u32 %v1455_v52, %v306_v48  ;;  %v312_v26 = vshll.u32 %v1456_v54, %v306_v48 }
  0x6d   : > { %v225_v14 = vsel %vm221_vm2, %v205_v63, %v208_v7  ;;  %v226_v15 = vsel %vm224_vm4, %v214_v9, 2102212464  ;;  %v229_v16 = vsel %vm221_vm2, %v208_v7, %v211_v8  ;;  %v233_v17 = vsel %vm221_vm2, %v211_v8, %v214_v9 }
  0x6e   : > { %v227_v18 = vsel %vm223_vm5, %v211_v8, %v226_v15  ;;  %v230_v23 = vsel %vm224_vm4, %v217_v11, 920167782  ;;  %v234_v24 = vsel %vm224_vm4, %v220_v12, 1326507024  ;;  %v308_v29 = vshrl.u32 %v1455_v52, %v307_v10 }
  0x6f   : > { %v231_v27 = vsel %vm223_vm5, %v214_v9, %v230_v23  ;;  %v235_v28 = vsel %vm223_vm5, %v217_v11, %v234_v24  ;;  %v310_v30 = vshrl.u32 %v1456_v54, %v307_v10  ;;  %v228_v31 = vsel %vm222_vm3, %v225_v14, %v227_v18 }
  0x70   : > { %v232_v32 = vsel %vm222_vm3, %v229_v16, %v231_v27  ;;  %v236_v33 = vsel %vm222_vm3, %v233_v17, %v235_v28  ;;  %v313_v34 = vshrl.u32 %v1457_v56, %v307_v10  ;;  %v315_v42 = vshll.u32 %v1457_v56, %v306_v48 }
  0x71   : > { %v1667_v35 = vmul.u32.u64.low %v1635_v47, %v236_v33  ;;  %v1668_v36 = vmul.u32.u64.high %v1635_v47, %v236_v33, %v1667_v35  ;;  %v1671_v37 = vmul.u32.u64.low %v1635_v47, %v232_v32  ;;  %v1672_v38 = vmul.u32.u64.high %v1635_v47, %v232_v32, %v1671_v37 }
  0x72   : > { %v311_v39 = vor.u32 %v310_v30, %v309_v13  ;;  %v314_v40 = vor.u32 %v313_v34, %v312_v26  ;;  %v316_v44 = vshrl.u32 %v1458_v58, %v307_v10  ;;  %v318_v43 = vshll.u32 %v1458_v58, %v306_v48 }
  0x73   : > { %v319_v45 = vshrl.u32 %v1459_v60, %v307_v10  ;;  %v321_v51 = vshll.u32 %v1459_v60, %v306_v48  ;;  %v322_v53 = vshrl.u32 %v1460_v5, %v307_v10  ;;  %v244_v55 = vmul.u32 %v1635_v47, %v228_v31 }
  0x74   : > { %v317_v57 = vor.u32 %v316_v44, %v315_v42  ;;  %vm324_vm7 = vcmp.lt.s32.totalorder %v1646_v62, 1  ;;  %vm325_vm8 = vcmp.lt.s32.totalorder %v1646_v62, 2  ;;  %vm246_vm9 = vc.u32 %v1668_v36, %v1671_v37 }
  0x75   : > { %v247_v59 = vadd.s32 1, %v1672_v38  ;;  %v320_v61 = vor.u32 %v319_v45, %v318_v43  ;;  %vm326_vm10 = vcmp.lt.s32.totalorder %v1646_v62, 3  ;;  %v323_v63 = vor.u32 %v322_v53, %v321_v51 }
  0x76   : > { %vm327_vm11 = vcmp.lt.s32.totalorder %v1646_v62, 4  ;;  %v328_v48 = vsel %vm324_vm7, %v308_v29, %v311_v39  ;;  %v332_v0 = vsel %vm324_vm7, %v311_v39, %v314_v40  ;;  %v336_v4 = vsel %vm324_vm7, %v314_v40, %v317_v57 }
  0x77   : > { %v248_v47 = vsel %vm246_vm9, %v247_v59, %v1672_v38  ;;  %v329_v2 = vsel %vm327_vm11, %v317_v57, 2102212464  ;;  %v333_v3 = vsel %vm327_vm11, %v320_v61, 920167782  ;;  %v337_v9 = vsel %vm327_vm11, %v323_v63, 1326507024 }
  0x78   : > { %v249_v6 = vadd.s32 %v248_v47, %v244_v55  ;;  %v330_v7 = vsel %vm326_vm10, %v314_v40, %v329_v2  ;;  %v334_v8 = vsel %vm326_vm10, %v317_v57, %v333_v3  ;;  %v338_v12 = vsel %vm326_vm10, %v320_v61, %v337_v9 }
  0x79   : > { %v331_v10 = vsel %vm325_vm8, %v328_v48, %v330_v7  ;;  %v335_v11 = vsel %vm325_vm8, %v332_v0, %v334_v8  ;;  %v407_v13 = vsel %vm406_vm6, %v1639_v50, 0  ;;  %v339_v15 = vsel %vm325_vm8, %v336_v4, %v338_v12 }
  0x7a   : > { %v250_v14 = vadd.s32 536870912, %v249_v6  ;;  %v1700_v16 = vmul.u32.u64.low %v1637_v49, %v335_v11  ;;  %v1701_v17 = vmul.u32.u64.high %v1637_v49, %v335_v11, %v1700_v16  ;;  %v402_v24 = vand.u32 8388607, %v395_v46 }
  0x7b   : > { %v1705_v18 = vmul.u32.u64.low %v1637_v49, %v339_v15  ;;  %v1706_v23 = vmul.u32.u64.high %v1637_v49, %v339_v15, %v1705_v18  ;;  %v409_v27 = vand.u32 31, %v407_v13  ;;  %v498_v50 = vand.u32 2147483647, %v1632_v41 }
  0x7c   : > { %v1710_v26 = vshrl.u32 %v250_v14, 30  ;;  %v347_v62 = vmul.u32 %v1637_v49, %v331_v10  ;;  %v350_v29 = vadd.s32 1, %v1701_v17  ;;  %v187_v31 = vand.u32 1, %v1613_v1 }
  0x7d   : > { %v410_v30 = vsub.s32 32, %v409_v27  ;;  %vm349_vm12 = vc.u32 %v1706_v23, %v1700_v16  ;;  %v403_v32 = vor.u32 8388608, %v402_v24  ;;  %v501_v33 = vand.u32 2139095040, %v1632_v41 }
  0x7e   : > { %v252_v28 = vshll.u32 %v1710_v26, 30  ;;  %v351_v35 = vsel %vm349_vm12, %v350_v29, %v1701_v17  ;;  %v1723_v38 = vshrl.u32 %v407_v13, 5  ;;  %v1727_v49 = vand.u32 8388607, %v498_v50 }
  0x7f   : > { %v352_v39 = vadd.s32 %v351_v35, %v347_v62  ;;  %v412_v40 = vshll.u32 %v1455_v52, %v409_v27  ;;  %v413_v42 = vshrl.u32 %v1456_v54, %v410_v30  ;;  %v415_v44 = vshll.u32 %v1456_v54, %v409_v27 }
  0x80   : > { %v1720_v34 = vsub.s32 %v249_v6, %v252_v28  ;;  %v416_v45 = vshrl.u32 %v1457_v56, %v410_v30  ;;  %v418_v51 = vshll.u32 %v1457_v56, %v409_v27  ;;  %v419_v53 = vshrl.u32 %v1458_v58, %v410_v30 }
  0x81   : > { %v353_v55 = vadd.s32 536870912, %v352_v39  ;;  %v421_v57 = vshll.u32 %v1458_v58, %v409_v27  ;;  %v1737_v59 = vshll.u32 %v403_v32, 8  ;;  %v502_v61 = vshrl.u32 %v501_v33, 23 }
  0x82   : > { %v255_v43 = vsub.s32 0, %v1720_v34  ;;  %v245_v63 = vadd.s32 %v1671_v37, %v1668_v36  ;;  %v411_v0 = vshrl.u32 %v1455_v52, %v410_v30  ;;  %vm430_vm13 = vcmp.lt.s32.totalorder %v1723_v38, 4 }
  0x83   : > { %v354_v47 = vshrl.u32 %v353_v55, 30  ;;  %v414_v2 = vor.u32 %v413_v42, %v412_v40  ;;  %v422_v3 = vshrl.u32 %v1459_v60, %v410_v30  ;;  %v424_v4 = vshll.u32 %v1459_v60, %v409_v27 }
  0x84   : > { %v1163_v48 = vmin.u32 %v255_v43, %v1720_v34  ;;  %v417_v7 = vor.u32 %v416_v45, %v415_v44  ;;  %v420_v8 = vor.u32 %v419_v53, %v418_v51  ;;  %v425_v9 = vshrl.u32 %v1460_v5, %v410_v30 }
  0x85   : > { %v355_v10 = vshll.u32 %v354_v47, 30  ;;  %v423_v11 = vor.u32 %v422_v3, %v421_v57  ;;  %vm427_vm14 = vcmp.lt.s32.totalorder %v1723_v38, 1  ;;  %vm429_vm15 = vcmp.lt.s32.totalorder %v1723_v38, 3 }
  0x86   : > { %v257_v6 = vclz %v1163_v48  ;;  %v426_v37 = vor.u32 %v425_v9, %v424_v4  ;;  %v432_v12 = vsel %vm430_vm13, %v420_v8, 2102212464  ;;  %v1174_v13 = vadd.s32 4294967169, %v502_v61 }
  0x87   : > { %v1752_v14 = vsub.s32 %v352_v39, %v355_v10  ;;  %vm428_vm1 = vcmp.lt.s32.totalorder %v1723_v38, 2  ;;  %v431_v15 = vsel %vm427_vm14, %v411_v0, %v414_v2  ;;  %v436_v17 = vsel %vm430_vm13, %v423_v11, 920167782 }
  0x88   : > { %v1164_v36 = vadd.s32 4294967294, %v257_v6  ;;  %vm294_vm3 = vcmp.lt.s32.totalorder %v1619_v20, 0  ;;  %v435_v18 = vsel %vm427_vm14, %v414_v2, %v417_v7  ;;  %v437_v24 = vsel %vm429_vm15, %v420_v8, %v436_v17 }
  0x89   : > { %v440_v27 = vsel %vm430_vm13, %v426_v37, 1326507024  ;;  %v358_v28 = vsub.s32 0, %v1752_v14  ;;  %v433_v29 = vsel %vm429_vm15, %v417_v7, %v432_v12  ;;  %v439_v30 = vsel %vm427_vm14, %v417_v7, %v420_v8 }
  0x8a   : > { %vm1165_vm2 = vcmp.lt.s32.totalorder %v1164_v36, 0  ;;  %vm1773_vm4 = vcmp.le.f32.partialorder %v189_v22, 0.7853982  ;;  %v441_v40 = vsel %vm429_vm15, %v423_v11, %v440_v27  ;;  %v275_v42 = vsub.s32 4, %v1710_v26 }
  0x8b   : > { %v260_v62 = vsel %vm1165_vm2, 0, %v1164_v36  ;;  %v1167_v44 = vmin.u32 %v358_v28, %v1752_v14  ;;  %v378_v43 = vsub.s32 4, %v354_v47  ;;  %v438_v45 = vsel %vm428_vm1, %v435_v18, %v437_v24 }
  0x8c   : > { %v261_v33 = vsub.s32 32, %v260_v62  ;;  %v262_v35 = vshll.u32 %v1720_v34, %v260_v62  ;;  %v265_v39 = vsub.s32 4294967266, %v260_v62  ;;  %vm1786_vm5 = vcmp.le.f32.partialorder %v292_v25, 0.7853982 }
  0x8d   : > { %v434_v34 = vsel %vm428_vm1, %v431_v15, %v433_v29  ;;  %v442_v55 = vsel %vm428_vm1, %v439_v30, %v441_v40  ;;  %v360_v57 = vclz %v1167_v44  ;;  %v508_v0 = vadd.s32 1, %v1174_v13 }
  0x8e   : > { %v263_v51 = vshrl.u32 %v245_v63, %v261_v33  ;;  %v266_v22 = vadd.s32 127, %v265_v39  ;;  %v1795_v61 = vmul.u32.u64.low %v1737_v59, %v442_v55  ;;  %v1796_v48 = vmul.u32.u64.high %v1737_v59, %v442_v55, %v1795_v61 }
  0x8f   : > { %v1799_v3 = vmul.u32.u64.low %v1737_v59, %v438_v45  ;;  %v1800_v25 = vmul.u32.u64.high %v1737_v59, %v438_v45, %v1799_v3  ;;  %v348_v4 = vadd.s32 %v1700_v16, %v1706_v23  ;;  %v1168_v6 = vadd.s32 4294967294, %v360_v57 }
  0x90   : > { %v264_v63 = vor.u32 %v263_v51, %v262_v35  ;;  %v267_v2 = vshll.u32 %v266_v22, 23  ;;  %v506_v38 = vor.u32 8388608, %v1727_v49  ;;  %vm509_vm6 = vcmp.gt.s32.totalorder %v508_v0, 0 }
  0x91   : > { %v276_v9 = vsel %vm191_vm0, %v275_v42, %v1710_v26  ;;  %v510_v10 = vsel %vm509_vm6, %v508_v0, 0  ;;  %vm1169_vm7 = vcmp.lt.s32.totalorder %v1168_v6, 0  ;;  %v379_v11 = vsel %vm294_vm3, %v378_v43, %v354_v47 }
  0x92   : > { %v268_v7 = vor.u32 4788187, %v267_v2  ;;  %v271_v8 = vcvt.s32.f32 %v264_v63  ;;  %v450_v36 = vmul.u32 %v1737_v59, %v434_v34  ;;  %vm452_vm8 = vc.u32 %v1796_v48, %v1799_v3 }
  0x93   : > { %v363_v23 = vsel %vm1169_vm7, 0, %v1168_v6  ;;  %v453_v49 = vadd.s32 1, %v1800_v25  ;;  %v512_v37 = vand.u32 31, %v510_v10  ;;  %v278_v12 = vsel %vm1773_vm4, 0, %v276_v9 }
  0x94   : > { %v269_v16 = vand.u32 2147483647, %v268_v7  ;;  %v364_v13 = vsub.s32 32, %v363_v23  ;;  %v365_v26 = vshll.u32 %v1752_v14, %v363_v23  ;;  %v368_v15 = vsub.s32 4294967266, %v363_v23 }
  0x95   : > { %v1818_v18 = vand.u32 3, %v278_v12  ;;  %v454_v59 = vsel %vm452_vm8, %v453_v49, %v1800_v25  ;;  %v513_v47 = vsub.s32 32, %v512_v37  ;;  %v1823_v62 = vsel %vm1786_vm5, 0, %v379_v11 }
  0x96   : > { %v272_v17 = vmul.f32 %v271_v8, %v269_v16  ;;  %v366_v24 = vshrl.u32 %v348_v4, %v364_v13  ;;  %v369_v27 = vadd.s32 127, %v368_v15  ;;  %v455_v28 = vadd.s32 %v454_v59, %v450_v36 }
  0x97   : > { %v1825_v30 = vshrl.u32 %v510_v10, 5  ;;  %v515_v33 = vshll.u32 %v1455_v52, %v512_v37  ;;  %v518_v14 = vshll.u32 %v1456_v54, %v512_v37  ;;  %v516_v42 = vshrl.u32 %v1456_v54, %v513_v47 }
  0x98   : > { %v273_v29 = vxor.u32 2147483648, %v272_v17  ;;  %v367_v35 = vor.u32 %v366_v24, %v365_v26  ;;  %v370_v39 = vshll.u32 %v369_v27, 23  ;;  %v456_v40 = vadd.s32 536870912, %v455_v28 }
  0x99   : > { %v519_v43 = vshrl.u32 %v1457_v56, %v513_v47  ;;  %v521_v45 = vshll.u32 %v1457_v56, %v512_v37  ;;  %v522_v51 = vshrl.u32 %v1458_v58, %v513_v47  ;;  %v514_v54 = vshrl.u32 %v1455_v52, %v513_v47 }
  0x9a   : > { %v274_v44 = vsel %vm191_vm0, %v273_v29, %v272_v17  ;;  %v371_v34 = vor.u32 4788187, %v370_v39  ;;  %v374_v55 = vcvt.s32.f32 %v367_v35  ;;  %v1838_v57 = vshrl.u32 %v456_v40, 30 }
  0x9b   : > { %v277_v22 = vsel %vm1773_vm4, %v1617_v19, %v274_v44  ;;  %v524_v61 = vshll.u32 %v1458_v58, %v512_v37  ;;  %v525_v0 = vshrl.u32 %v1459_v60, %v513_v47  ;;  %v517_v2 = vor.u32 %v516_v42, %v515_v33 }
  0x9c   : > { %1306 = vcosq.f32 %v277_v22  ;;  %v372_v63 = vand.u32 2147483647, %v371_v34  ;;  %v458_v56 = vshll.u32 %v1838_v57, 30  ;;  %vm287_vm9 = vcmp.eq.s32.totalorder %v1818_v18, 2 }
  0x9d   : > { %1308 = vsinq.f32 %v277_v22  ;;  %v520_v32 = vor.u32 %v519_v43, %v518_v14  ;;  %v526_v25 = vor.u32 %v525_v0, %v524_v61  ;;  %v527_v4 = vshll.u32 %v1459_v60, %v512_v37 }
  0x9e   : > { %v528_v6 = vshrl.u32 %v1460_v5, %v513_v47  ;;  %v375_v7 = vmul.f32 %v374_v55, %v372_v63  ;;  %v1847_v8 = vsub.s32 %v455_v28, %v458_v56  ;;  %v523_v52 = vor.u32 %v522_v51, %v521_v45 }
  0x9f   : > { %vm530_vm10 = vcmp.lt.s32.totalorder %v1825_v30, 1  ;;  %vm532_vm11 = vcmp.lt.s32.totalorder %v1825_v30, 3  ;;  %vm533_vm12 = vcmp.lt.s32.totalorder %v1825_v30, 4  ;;  %v546_v9 = vshll.u32 %v506_v38, 8 }
  0xa0   : > { %v529_v58 = vor.u32 %v528_v6, %v527_v4  ;;  %vm283_vm13 = vcmp.lt.s32.totalorder %v1818_v18, 2  ;;  %v376_v10 = vxor.u32 2147483648, %v375_v7  ;;  %v461_v11 = vsub.s32 0, %v1847_v8 }
  0xa1   : > { %v534_v60 = vsel %vm530_vm10, %v514_v54, %v517_v2  ;;  %v535_v5 = vsel %vm533_vm12, %v523_v52, 2102212464  ;;  %vm531_vm14 = vcmp.lt.s32.totalorder %v1825_v30, 2  ;;  %v538_v16 = vsel %vm530_vm10, %v517_v2, %v520_v32 }
  0xa2   : > { %v536_v36 = vsel %vm532_vm11, %v520_v32, %v535_v5  ;;  %v539_v38 = vsel %vm533_vm12, %v526_v25, 920167782  ;;  %v377_v23 = vsel %vm294_vm3, %v376_v10, %v375_v7  ;;  %v1868_v49 = vand.u32 3, %v1823_v62 }
  0xa3   : > { %v1171_v37 = vmin.u32 %v461_v11, %v1847_v8  ;;  %v694_v13 = vadd.s32 3, %v278_v12  ;;  %v380_v26 = vsel %vm1786_vm5, %v1619_v20, %v377_v23  ;;  %v537_v15 = vsel %vm531_vm14, %v534_v60, %v536_v36 }
  0xa4   : > { %v540_v17 = vsel %vm532_vm11, %v523_v52, %v539_v38  ;;  %v542_v59 = vsel %vm530_vm10, %v520_v32, %v523_v52  ;;  %vm281_vm15 = vweird.f32 %v1617_v19  ;;  %1310 = vcosq.f32 %v380_v26 }
  0xa5   : > { %v463_v47 = vclz %v1171_v37  ;;  %v541_v12 = vsel %vm531_vm14, %v538_v16, %v540_v17  ;;  %v543_v53 = vsel %vm533_vm12, %v529_v58, 1326507024  ;;  %1312 = vsinq.f32 %v380_v26 }
  0xa6   : > { %v1307_v24 = vpop.eup %1306  ;;  %v544_v27 = vsel %vm532_vm11, %v526_v25, %v543_v53  ;;  %v1887_v28 = vmul.u32.u64.low %v546_v9, %v541_v12  ;;  %v1888_v29 = vmul.u32.u64.high %v546_v9, %v541_v12, %v1887_v28  ;;  %vm284_vm0 = vcmp.eq.s32.totalorder %v1818_v18, 0 }
  0xa7   : > { %v1309_v33 = vpop.eup %1308  ;;  %v288_v14 = vxor.u32 2147483648, %v1307_v24  ;;  %v1172_v35 = vadd.s32 4294967294, %v463_v47  ;;  %v545_v39 = vsel %vm531_vm14, %v542_v59, %v544_v27  ;;  %v695_v43 = vand.u32 3, %v694_v13 }
  0xa8   : > { %v285_v40 = vxor.u32 2147483648, %v1309_v33  ;;  %v1894_v42 = vmul.u32.u64.low %v546_v9, %v545_v39  ;;  %v1895_v44 = vmul.u32.u64.high %v546_v9, %v545_v39, %v1894_v42  ;;  %vm386_vm1 = vcmp.lt.s32.totalorder %v1868_v49, 2 }
  0xa9   : > { %v289_v45 = vsel %vm287_vm9, %v288_v14, %v1309_v33  ;;  %v451_v51 = vadd.s32 %v1799_v3, %v1796_v48  ;;  %vm1173_vm2 = vcmp.lt.s32.totalorder %v1172_v35, 0  ;;  %v553_v22 = vmul.u32 %v546_v9, %v537_v15 }
  0xaa   : > { %v286_v34 = vsel %vm284_vm0, %v1307_v24, %v285_v40  ;;  %vm384_vm3 = vweird.f32 %v1619_v20  ;;  %v466_v30 = vsel %vm1173_vm2, 0, %v1172_v35  ;;  %v556_v55 = vadd.s32 1, %v1888_v29 }
  0xab   : > { %v798_v54 = vadd.s32 3, %v1823_v62  ;;  %vm387_vm4 = vcmp.eq.s32.totalorder %v1868_v49, 0  ;;  %v467_v61 = vsub.s32 32, %v466_v30  ;;  %v468_v0 = vshll.u32 %v1847_v8, %v466_v30 }
  0xac   : > { %v471_v63 = vsub.s32 4294967266, %v466_v30  ;;  %vm1909_vm5 = vcmp.eq.s32.totalorder %v187_v31, 1  ;;  %v290_v3 = vsel %vm283_vm13, %v286_v34, %v289_v45  ;;  %vm555_vm6 = vc.u32 %v1895_v44, %v1887_v28 }
  0xad   : > { %vm696_vm7 = vcmp.lt.s32.totalorder %v695_v43, 2  ;;  %vm697_vm8 = vcmp.eq.s32.totalorder %v695_v43, 0  ;;  %v469_v62 = vshrl.u32 %v451_v51, %v467_v61  ;;  %v557_v2 = vsel %vm555_vm6, %v556_v55, %v1888_v29 }
  0xae   : > { %v472_v56 = vadd.s32 127, %v471_v63  ;;  %v699_v32 = vsel %vm697_vm8, %v1307_v24, %v285_v40  ;;  %vm390_vm9 = vcmp.eq.s32.totalorder %v1868_v49, 2  ;;  %v558_v1 = vadd.s32 %v557_v2, %v553_v22  ;;  %v1311_v25 = vpop.eup %1310 }
  0xaf   : > { %vm700_vm10 = vcmp.eq.s32.totalorder %v695_v43, 2  ;;  %v799_v31 = vand.u32 3, %v798_v54  ;;  %v470_v4 = vor.u32 %v469_v62, %v468_v0  ;;  %v481_v18 = vsub.s32 4, %v1838_v57  ;;  %v1313_v8 = vpop.eup %1312 }
  0xb0   : > { %v473_v6 = vshll.u32 %v472_v56, 23  ;;  %v702_v7 = vsel %vm700_vm10, %v288_v14, %v1309_v33  ;;  %v291_v52 = vsel %vm281_vm15, nan, %v290_v3  ;;  %v391_v58 = vxor.u32 2147483648, %v1311_v25 }
  0xb1   : > { %v559_v9 = vadd.s32 536870912, %v558_v1  ;;  %v703_v10 = vsel %vm696_vm7, %v699_v32, %v702_v7  ;;  %v388_v11 = vxor.u32 2147483648, %v1313_v8  ;;  %v477_v5 = vcvt.s32.f32 %v470_v4 }
  0xb2   : > { %v474_v60 = vor.u32 4788187, %v473_v6  ;;  %vm800_vm11 = vcmp.lt.s32.totalorder %v799_v31, 2  ;;  %v392_v36 = vsel %vm390_vm9, %v391_v58, %v1313_v8  ;;  %vm801_vm12 = vcmp.eq.s32.totalorder %v799_v31, 0 }
  0xb3   : > { %v1925_v16 = vshrl.u32 %v559_v9, 30  ;;  %vm804_vm13 = vcmp.eq.s32.totalorder %v799_v31, 2  ;;  %v389_v38 = vsel %vm387_vm4, %v1311_v25, %v388_v11  ;;  %v803_v37 = vsel %vm801_vm12, %v1311_v25, %v388_v11 }
  0xb4   : > { %v475_v23 = vand.u32 2147483647, %v474_v60  ;;  %v806_v13 = vsel %vm804_vm13, %v391_v58, %v1313_v8  ;;  %v393_v26 = vsel %vm386_vm1, %v389_v38, %v392_v36  ;;  %v704_v17 = vsel %vm281_vm15, nan, %v703_v10 }
  0xb5   : > { %v561_v15 = vshll.u32 %v1925_v16, 30  ;;  %v807_v59 = vsel %vm800_vm11, %v803_v37, %v806_v13  ;;  %v394_v47 = vsel %vm384_vm3, nan, %v393_v26  ;;  %vm396_vm14 = vcmp.le.f32.partialorder %v395_v46, 0.7853982 }
  0xb6   : > { %v478_v12 = vmul.f32 %v477_v5, %v475_v23  ;;  %v808_v53 = vsel %vm384_vm3, nan, %v807_v59  ;;  %vm397_vm0 = vcmp.lt.s32.totalorder %v1621_v21, 0  ;;  %v1019_v19 = vsel %vm1909_vm5, %v291_v52, %v704_v17 }
  0xb7   : > { %v562_v49 = vsub.s32 %v558_v1, %v561_v15  ;;  %v482_v27 = vsel %vm397_vm0, %v481_v18, %v1838_v57  ;;  %v1020_v29 = vsel %vm1909_vm5, %v394_v47, %v808_v53  ;;  %1023 = vst [vmem:[#allocation2] sm:$0xff] %v1019_v19  ;;  %v554_v57 = vadd.s32 %v1887_v28, %v1895_v44 }
  0xb8   : > { %v479_v24 = vxor.u32 2147483648, %v478_v12  ;;  %1024 = vst [vmem:[#allocation2 + $0x8] sm:$0xff] %v1020_v29  ;;  %v484_v35 = vsel %vm396_vm14, 0, %v482_v27  ;;  %vm487_vm6 = vweird.f32 %v1621_v21  ;;  %v584_v6 = vsub.s32 4, %v1925_v16 }
  0xb9   : > { %v564_v33 = vsub.s32 0, %v562_v49  ;;  %v902_v40 = vadd.s32 3, %v484_v35  ;;  %v488_v43 = vand.u32 3, %v484_v35  ;;  %vm500_vm9 = vcmp.lt.s32.totalorder %v1632_v41, 0 }
  0xba   : > { %v480_v20 = vsel %vm397_vm0, %v479_v24, %v478_v12  ;;  %vm499_vm10 = vcmp.le.f32.partialorder %v498_v50, 0.7853982  ;;  %v585_v9 = vsel %vm500_vm9, %v584_v6, %v1925_v16 }
  0xbb   : > { %v483_v14 = vsel %vm396_vm14, %v1621_v21, %v480_v20  ;;  %v1175_v46 = vmin.u32 %v564_v33, %v562_v49  ;;  %v903_v51 = vand.u32 3, %v902_v40  ;;  %vm490_vm1 = vcmp.eq.s32.totalorder %v488_v43, 0 }
  0xbc   : > { %1314 = vcosq.f32 %v483_v14  ;;  %vm493_vm2 = vcmp.eq.s32.totalorder %v488_v43, 2  ;;  %vm489_vm7 = vcmp.lt.s32.totalorder %v488_v43, 2  ;;  %v587_v60 = vsel %vm499_vm10, 0, %v585_v9 }
  0xbd   : > { %1316 = vsinq.f32 %v483_v14  ;;  %v566_v39 = vclz %v1175_v46  ;;  %vm908_vm3 = vcmp.eq.s32.totalorder %v903_v51, 2  ;;  %vm905_vm4 = vcmp.eq.s32.totalorder %v903_v51, 0 }
  0xbe   : > { %vm904_vm8 = vcmp.lt.s32.totalorder %v903_v51, 2  ;;  %v1006_v5 = vadd.s32 3, %v587_v60  ;;  %v591_v36 = vand.u32 3, %v587_v60 }
  0xbf   : > { %v1176_v42 = vadd.s32 4294967294, %v566_v39 }
  0xc0   : > { %v1007_v38 = vand.u32 3, %v1006_v5  ;;  %vm596_vm11 = vcmp.eq.s32.totalorder %v591_v36, 2  ;;  %vm593_vm13 = vcmp.eq.s32.totalorder %v591_v36, 0  ;;  %vm592_vm0 = vcmp.lt.s32.totalorder %v591_v36, 2 }
  0xc1   : > { %vm1177_vm15 = vcmp.lt.s32.totalorder %v1176_v42, 0 }
  0xc2   : > { %v569_v45 = vsel %vm1177_vm15, 0, %v1176_v42  ;;  %vm1012_vm12 = vcmp.eq.s32.totalorder %v1007_v38, 2  ;;  %vm1009_vm14 = vcmp.eq.s32.totalorder %v1007_v38, 0  ;;  %vm1008_vm15 = vcmp.lt.s32.totalorder %v1007_v38, 2 }
  0xc3   : > { %v570_v22 = vsub.s32 32, %v569_v45  ;;  %v571_v34 = vshll.u32 %v562_v49, %v569_v45  ;;  %v574_v30 = vsub.s32 4294967266, %v569_v45 }
  0xc5   : > { %v572_v55 = vshrl.u32 %v554_v57, %v570_v22  ;;  %v575_v54 = vadd.s32 127, %v574_v30 }
  0xc6   : > { %v1315_v61 = vpop.eup %1314 }
  0xc7   : > { %v1317_v0 = vpop.eup %1316  ;;  %v494_v63 = vxor.u32 2147483648, %v1315_v61  ;;  %v573_v3 = vor.u32 %v572_v55, %v571_v34  ;;  %v576_v62 = vshll.u32 %v575_v54, 23 }
  0xc8   : > { %v491_v28 = vxor.u32 2147483648, %v1317_v0 }
  0xc9   : > { %v495_v44 = vsel %vm493_vm2, %v494_v63, %v1317_v0  ;;  %v577_v56 = vor.u32 4788187, %v576_v62  ;;  %v580_v2 = vcvt.s32.f32 %v573_v3  ;;  %v910_v32 = vsel %vm908_vm3, %v494_v63, %v1317_v0 }
  0xca   : > { %v492_v1 = vsel %vm490_vm1, %v1315_v61, %v491_v28  ;;  %v907_v31 = vsel %vm905_vm4, %v1315_v61, %v491_v28  ;;  %vm590_vm1 = vweird.f32 %v1632_v41 }
  0xcb   : > { %v496_v25 = vsel %vm489_vm7, %v492_v1, %v495_v44  ;;  %v578_v4 = vand.u32 2147483647, %v577_v56  ;;  %v911_v18 = vsel %vm904_vm8, %v907_v31, %v910_v32 }
  0xcc   : > { %v497_v7 = vsel %vm487_vm6, nan, %v496_v25  ;;  %v912_v8 = vsel %vm487_vm6, nan, %v911_v18 }
  0xcd   : > { %v581_v52 = vmul.f32 %v580_v2, %v578_v4  ;;  %v1021_v21 = vsel %vm1909_vm5, %v497_v7, %v912_v8 }
  0xce   : > { %1025 = vst [vmem:[#allocation2 + $0x10] sm:$0xff] %v1021_v21 }
  0xcf   : > { %v582_v58 = vxor.u32 2147483648, %v581_v52 }
  0xd1   : > { %v583_v10 = vsel %vm500_vm9, %v582_v58, %v581_v52 }
  0xd2   : > { %v586_v11 = vsel %vm499_vm10, %v1632_v41, %v583_v10 }
  0xd3   : > { %1318 = vcosq.f32 %v586_v11 }
  0xd4   : > { %1320 = vsinq.f32 %v586_v11 }
  0xdd   : > { %v1319_v23 = vpop.eup %1318 }
  0xde   : > { %v1321_v37 = vpop.eup %1320  ;;  %v597_v13 = vxor.u32 2147483648, %v1319_v23 }
  0xdf   : > { %v594_v50 = vxor.u32 2147483648, %v1321_v37 }
  0xe0   : > { %v598_v16 = vsel %vm596_vm11, %v597_v13, %v1321_v37  ;;  %v1014_v26 = vsel %vm1012_vm12, %v597_v13, %v1321_v37 }
  0xe1   : > { %v595_v15 = vsel %vm593_vm13, %v1319_v23, %v594_v50  ;;  %v1011_v17 = vsel %vm1009_vm14, %v1319_v23, %v594_v50 }
  0xe2   : > { %v599_v59 = vsel %vm592_vm0, %v595_v15, %v598_v16  ;;  %v1015_v47 = vsel %vm1008_vm15, %v1011_v17, %v1014_v26 }
  0xe3   : > { %v600_v12 = vsel %vm590_vm1, nan, %v599_v59  ;;  %v1016_v53 = vsel %vm590_vm1, nan, %v1015_v47 }
  0xe4   : > { %v1022_v49 = vsel %vm1909_vm5, %v600_v12, %v1016_v53 }
  0xe5   : > { %1026 = vst [vmem:[#allocation2 + $0x18] sm:$0xff] %v1022_v49 }
  0xe6 PF: > { %v1027_v41 = vld [vmem:[%s1604_s30] sm:$0xff]  ;;  %v1028_v27 = vld [vmem:[%s1604_s30 + $0x8] sm:$0xff]  ;;  %s1195_s18 = sshll.u32 %s1438_s10, 2  ;;  %v1029_v48 = vld [vmem:[%s1604_s30 + $0x10] sm:$0xff]  ;;  %s1196_s23 = sshll.u32 %s1434_s9, 3 }
  0xe7   : > { %v1031_v24 = vld [vmem:[#allocation2] sm:$0xff]  ;;  %v1032_v29 = vld [vmem:[#allocation2 + $0x8] sm:$0xff]  ;;  %v1033_v33 = vld [vmem:[#allocation2 + $0x10] sm:$0xff]  ;;  %s1059_s2 = sshll.u32 %s1610_s3, 4  ;;  %s1056_s26 = sadd.s32 %s1196_s23, %s1195_s18  ;;  %s1969_s2 = int_to_ptr.vmem [resolvable:$true] %s1059_s2 }
  0xe8   : > { %v1035_v19 = vadd.f32 %v1031_v24, %v1027_v41  ;;  %v1036_v20 = vadd.f32 %v1032_v29, %v1028_v27  ;;  %v1037_v14 = vadd.f32 %v1033_v33, %v1029_v48  ;;  %v1030_v35 = vld [vmem:[%s1604_s30 + $0x18] sm:$0xff]  ;;  %s1197_s10 = sshll.u32 %s1056_s26, 7  ;;  %s1044_s15 = scalar_lea.sflag [#allocation5], %s1600_s20 }
  0xe9   : > { %s1977_s9 = scalar_lea.hbm %s2033_s1, %s1197_s10  ;;  %s1352_s19 = scalar_lea.vmem %s1969_s2, 512 }
  0xea   : > { %1039 = vst [vmem:[%s1610_s3] sm:$0xff] %v1035_v19  ;;  %1040 = vst [vmem:[%s1610_s3 + $0x8] sm:$0xff] %v1036_v20  ;;  %p1353_p8 = scmp.ne.s32.totalorder %s1969_s2, %s1352_s19  ;;  %p2046_p12 = scmp.ne.s32.totalorder %s2037_s22, 0 }
  0xeb   : > { %1041 = vst [vmem:[%s1610_s3 + $0x10] sm:$0xff] %v1037_v14  ;;  %s1461_s24 = smov [#allocation6]  }
  0xec   : > { %v1034_v46 = vld [vmem:[#allocation2 + $0x18] sm:$0xff]  ;;  %p1354_p0 = pnand %p1353_p8, %p2046_p12  ;;  %s1356_s28 = sshll.u32 %s1461_s24, 4  ;;  %s1357_s28 = int_to_ptr.vmem [resolvable:$false] %s1356_s28 }
  0xed   : > { %v1038_v39 = vadd.f32 %v1034_v46, %v1030_v35  ;;  %s1358_s29 = scalar_lea.vmem %s1357_s28, 1024  ;;  %p1359_p13 = scmp.lt.s32.totalorder %s1969_s2, %s1357_s28 }
  0xee   : > { %p1355_p11 = pneg %p1354_p0  ;;  %p1360_p1 = scmp.lt.s32.totalorder %s1358_s29, %s1352_s19 }
  0xef   : > { %1042 = vst [vmem:[%s1610_s3 + $0x18] sm:$0xff] %v1038_v39 }
  0xf0   : > { %p1361_p3 = por %p1360_p1, %p1359_p13 }
  0xf2   : > { %p1362_p5 = pnand %p1361_p3, %p1355_p11 }
  0xf4   : > { %1365 = shalt.err (!%p1362_p5)
}
  0xf5   : > { %s1366_s30 = scalar_lea.hbm %s1977_s9, 512  ;;  %s1370_s21 = scalar_lea.hbm %s2033_s1, 2048 }
  0xf6   : > { %p1367_p6 = scmp.ne.s32.totalorder %s1977_s9, %s1366_s30  ;;  %p1371_p4 = scmp.lt.u32.totalorder %s1977_s9, %s2033_s1 }
  0xf7   : > { %p1372_p10 = scmp.lt.u32.totalorder %s1370_s21, %s1366_s30  ;;  %p1374_p8 = scmp.lt.u32.totalorder %s1366_s30, %s1977_s9 }
  0xf8   : > { %p1368_p7 = pnand %p1367_p6, %p2046_p12 }
  0xf9   : > { %p1373_p9 = por %p1372_p10, %p1371_p4 }
  0xfa   : > { %p1369_p2 = pneg %p1368_p7 }
  0xfb   : > { %p1375_p0 = por %p1374_p8, %p1373_p9 }
  0xfd   : > { %p1376_p11 = pnand %p1375_p0, %p1369_p2 }
  0xff   : > { %1379 = shalt.err (!%p1376_p11)
}
 0x100   : > { %s1462_s26 = smov 128   ;;  %s1463_s10 = smov 8  }
 0x101   : > { %1218 = dma.vmem_to_hbm [thread:$0]  (%p2046_p12), %s1969_s2, 512, %s1977_s9, %s1044_s15, %s1462_s26, %s1462_s26, %s1463_s10  }
 0x102 PF: > { %p1229_p13 = scmp.ge.s32.totalorder %s1450_s13, 2  ;;  %s1074_s4 = sand.u32 1, %s1422_s6  }
 0x103   : > { %p2047_p1 = scmp.ne.s32.totalorder %s2038_s25, 0  ;;  %s1075_s5 = scalar_lea.sflag [#allocation5], %s1074_s4 }
 0x105   : > { %p1225_p3 = pnand %p1229_p13, %p2047_p1 }
 0x107   : > { %1417 = dma.done.wait (!%p1225_p3), %s1075_s5, 512  }
 0x108   : > { %1419 = vsyncadd (!%p1225_p3), %s1075_s5, 4294966784  ;;  %s17_s13 = sadd.s32 1, %s1450_s13   ;;  %s2048_s6 = smov %s1426_s7 }
 0x109   : > { %p14_p5 = scmp.ge.s32.totalorder %s17_s13, 6   ;;  %s2049_s7 = smov %s1430_s8 }
 0x10a   : > { %s2050_s8 = smov %s1552_s27  ;;  %s2051_s9 = smov %s1442_s11 }
 0x10b   : > { %s2052_s10 = smov %s1446_s12  ;;  %s2053_s11 = smov %s2056_s16 }
 0x10c   : > { %s2054_s12 = smov %s2060_s17  ;;  %16 = sbr.rel (!%p14_p5) target bundleno = 7 (0x7), region = 73 }
 0x113   :  { %1080 = vsyncpa [#allocation4], 1 }
 0x114   :  { %1082 = vsyncpa [#allocation4 + $0x1], 1 }
 0x115   :  { %1083 = vsyncpa [#allocation5], 1 }
 0x116   :  { %1085 = vsyncpa [#allocation5 + $0x1], 1 }

</bundles_post_ra>
